<compile_context>
chip_gen: v6e
topology: v6e:2x2x1
jax: 0.10.0
libtpu: 0.0.40
codegen_flags: <defaults>
</compile_context>

<pallas_src>
import functools

import jax
import jax.numpy as jnp
from jax.experimental import pallas as pl
from jax.experimental.pallas import tpu as pltpu

_MATMUL_DTYPE = jnp.bfloat16  # MXU operand dtype (accumulation stays f32)


# ---------------------------------------------------------------------------
# Kernel
# ---------------------------------------------------------------------------
def _fused_res_block_kernel(*refs, a, has_ds):
    """Fused mu + logvar ResidualBlock1dConv on one (C_in, TL) tile of x.

    refs = (x, vin, vout, w1_bd, w2_bd[, wd_stk], mu_out, lv_out)
      vin    : (2*C_in, 3)   columns = [s1, t1, t2'] (BN1 scale/shift, conv1-bias+BN2 shift)
      vout   : (2*C_out, 1)  folded constant shift (b*bias2 [+ a*(downsample BN shift)])
      w1_bd  : (2*C_in, 2*C_in)   block-diag conv1 weights (BN2 scale folded), bf16
      w2_bd  : (2*C_out, 2*C_in)  block-diag conv2 weights (scalar b folded), bf16
      wd_stk : (2*C_out, C_in)    stacked downsample weights (scalar a + BN folded), bf16
    First half of the stacked channel axis is the mu branch, second half is logvar.
    """
    if has_ds:
        x_ref, vin_ref, vout_ref, w1_ref, w2_ref, wd_ref, mu_ref, lv_ref = refs
    else:
        x_ref, vin_ref, vout_ref, w1_ref, w2_ref, mu_ref, lv_ref = refs
        wd_ref = None

    x = x_ref[...].astype(jnp.float32)               # (C_in, TL)
    x2 = jnp.concatenate([x, x], axis=0)             # (2*C_in, TL): [mu rows ; logvar rows]

    s1 = vin_ref[:, 0:1]                             # (2*C_in, 1)
    t1 = vin_ref[:, 1:2]
    t2 = vin_ref[:, 2:3]
    c = vout_ref[...]                                # (2*C_out, 1)

    # bn1 (folded, eval) -> relu
    h = jnp.maximum(x2 * s1 + t1, 0.0)
    # conv1 (+ conv1-bias + bn2 folded) -> relu, block-diagonal over both branches
    h = jnp.dot(w1_ref[...], h.astype(_MATMUL_DTYPE), preferred_element_type=jnp.float32)
    h = jnp.maximum(h + t2, 0.0)
    # conv2 (scalar b folded) + constant shift
    out = jnp.dot(w2_ref[...], h.astype(_MATMUL_DTYPE), preferred_element_type=jnp.float32) + c
    # residual path: downsample conv+BN (scalar a folded) or identity * a
    if has_ds:
        out = out + jnp.dot(wd_ref[...], x.astype(_MATMUL_DTYPE),
                            preferred_element_type=jnp.float32)
    else:
        out = out + a * x2

    c_out = mu_ref.shape[0]
    mu_ref[...] = out[:c_out].astype(mu_ref.dtype)
    lv_ref[...] = out[c_out:].astype(lv_ref.dtype)


# ---------------------------------------------------------------------------
# Parameter construction + host-side constant folding
# ---------------------------------------------------------------------------
def _fold_bn(gamma, beta, mean, var, eps=1e-5):
    scale = gamma / jnp.sqrt(var + eps)
    shift = beta - mean * scale
    return scale.astype(jnp.float32), shift.astype(jnp.float32)


def _bn_init(key, c):
    k1, k2, k3 = jax.random.split(key, 3)
    gamma = 1.0 + 0.1 * jax.random.normal(k1, (c,), jnp.float32)
    beta = 0.1 * jax.random.normal(k2, (c,), jnp.float32)
    mean = 0.1 * jax.random.normal(k3, (c,), jnp.float32)
    var = jnp.ones((c,), jnp.float32)
    return gamma, beta, mean, var


def _conv1x1_init(key, c_in, c_out):
    # PyTorch Conv1d default init: U(-1/sqrt(fan_in), 1/sqrt(fan_in)), kernel_size=1.
    bound = 1.0 / float(c_in) ** 0.5
    kw, kb = jax.random.split(key)
    w = jax.random.uniform(kw, (c_out, c_in), jnp.float32, -bound, bound)
    bias = jax.random.uniform(kb, (c_out,), jnp.float32, -bound, bound)
    return w, bias


def _fold_res_block(raw, a, b):
    """Fold BN / biases / scalars of one ResidualBlock1dConv into a small param dict."""
    bn1, w1, b1, bn2, w2, b2, ds = raw
    s1, t1 = _fold_bn(*bn1)
    s2, t2 = _fold_bn(*bn2)
    folded = dict(
        s1=s1, t1=t1,
        w1p=s2[:, None] * w1,          # bn2 scale folded into conv1 weights
        t2p=s2 * b1 + t2,              # conv1 bias folded into bn2 shift
        w2p=b * w2,                    # scalar b folded into conv2 weights
        cshift=b * b2,                 # scalar b folded into conv2 bias
    )
    if ds is not None:
        wd, bd, dsbn = ds
        sd, td = _fold_bn(*dsbn)
        folded["wdp"] = a * sd[:, None] * wd               # a + downsample BN into conv
        folded["cshift"] = folded["cshift"] + a * (sd * bd + td)
    return folded


def _pack_params(mu_f, lv_f, has_ds):
    """Stack mu/logvar folded params into a handful of kernel inputs."""
    def cat(name):
        return jnp.concatenate([mu_f[name], lv_f[name]], axis=0)

    def block_diag(name):
        wa, wb = mu_f[name], lv_f[name]
        top = jnp.concatenate([wa, jnp.zeros((wa.shape[0], wb.shape[1]), wa.dtype)], axis=1)
        bot = jnp.concatenate([jnp.zeros((wb.shape[0], wa.shape[1]), wb.dtype), wb], axis=1)
        return jnp.concatenate([top, bot], axis=0)

    vin = jnp.stack([cat("s1"), cat("t1"), cat("t2p")], axis=1).astype(jnp.float32)  # (2C_in,3)
    vout = cat("cshift")[:, None].astype(jnp.float32)                                # (2C_out,1)
    w1 = block_diag("w1p").astype(_MATMUL_DTYPE)                                     # (2C_in,2C_in)
    w2 = block_diag("w2p").astype(_MATMUL_DTYPE)                                     # (2C_out,2C_in)
    params = [vin, vout, w1, w2]
    if has_ds:
        params.append(cat("wdp").astype(_MATMUL_DTYPE))                              # (2C_out,C_in)
    return tuple(params)


def _init_res_block(key, c_in, c_out, a, b):
    keys = jax.random.split(key, 5)
    bn1 = _bn_init(keys[0], c_in)
    w1, b1 = _conv1x1_init(keys[1], c_in, c_in)
    bn2 = _bn_init(keys[2], c_in)
    w2, b2 = _conv1x1_init(keys[3], c_in, c_out)
    ds = None
    if c_in != c_out:
        kd, kdbn = jax.random.split(keys[4])
        wd, bd = _conv1x1_init(kd, c_in, c_out)
        dsbn = _bn_init(kdbn, c_out)
        ds = (wd, bd, dsbn)
    raw = (bn1, w1, b1, bn2, w2, b2, ds)
    return raw, _fold_res_block(raw, a, b), ds is not None


def _res_block_reference(raw, a, b, x):
    """Unfolded pure-f32 JAX reference following the PyTorch op order. x: (N, C_in, L)."""
    bn1, w1, b1, bn2, w2, b2, ds = raw

    def bn(h, p):
        s, t = _fold_bn(*p)
        return h * s[None, :, None] + t[None, :, None]

    def conv(h, w, bias):
        return jnp.einsum("oc,ncl->nol", w, h) + bias[None, :, None]

    out = jnp.maximum(bn(x, bn1), 0.0)
    out = conv(out, w1, b1)
    out = jnp.maximum(bn(out, bn2), 0.0)
    out = conv(out, w2, b2)
    res = x if ds is None else bn(conv(x, ds[0], ds[1]), ds[2])
    return a * res + b * out


# ---------------------------------------------------------------------------
# Wrapper
# ---------------------------------------------------------------------------
def _pick_length_tile(length, batch, c_in, c_out):
    """Lane-aligned length tile: as big as fits comfortably in VMEM, >=2 grid points
    for v7x's two TensorCores when the shape allows, always a multiple of 128."""
    c_big = max(c_in, c_out, 8)
    cap = min(8192, max(512, (524288 // c_big) // 128 * 128))  # scale tile with channel width
    n_lanes = pl.cdiv(length, 128)              # number of 128-wide lane blocks
    n_tiles = max(1, pl.cdiv(n_lanes * 128, cap))
    if batch * n_tiles < 2 and n_lanes >= 2:
        n_tiles = 2                              # keep both v7x TensorCores busy
    return 128 * pl.cdiv(n_lanes, n_tiles)


class ResidualFeatureCompressor:
    """JAX/Pallas port of networks/FeatureCompressor.ResidualFeatureCompressor (eval mode)."""

    def __init__(self, in_channels, out_channels, a, b, compression_power, key):
        self.a = float(a)
        self.b = float(b)
        self.compression_power = compression_power  # stored, unused in forward (as in PyTorch)
        self.c_in = in_channels
        self.c_out = out_channels
        kmu, klv = jax.random.split(key)
        self.mu_raw, mu_folded, mu_has_ds = _init_res_block(
            kmu, in_channels, out_channels, self.a, self.b)
        self.lv_raw, lv_folded, lv_has_ds = _init_res_block(
            klv, in_channels, out_channels, self.a, self.b)
        assert mu_has_ds == lv_has_ds
        self.has_ds = mu_has_ds
        self.params = _pack_params(mu_folded, lv_folded, self.has_ds)

    def __call__(self, feats):
        # feats: (N, C_in, L) -> (mu, logvar), each (N, C_out, L), same dtype as feats.
        n, c, length = feats.shape
        assert c == self.c_in
        tl = _pick_length_tile(length, n, self.c_in, self.c_out)
        l_pad = pl.cdiv(length, tl) * tl
        x = feats
        if l_pad != length:
            # Pad to lane-aligned tiles: keeps output stores unmasked / lane-dense.
            x = jnp.pad(x, ((0, 0), (0, 0), (0, l_pad - length)))
        grid = (n, l_pad // tl)

        def x_map(i, j):
            return (i, 0, j)

        def const_map(i, j):
            return (0, 0)

        in_specs = [pl.BlockSpec((None, self.c_in, tl), x_map)]
        in_specs += [pl.BlockSpec(p.shape, const_map) for p in self.params]
        out_spec = pl.BlockSpec((None, self.c_out, tl), x_map)
        out_shape = jax.ShapeDtypeStruct((n, self.c_out, l_pad), feats.dtype)

        kernel = functools.partial(_fused_res_block_kernel, a=self.a, has_ds=self.has_ds)
        mu, logvar = pl.pallas_call(
            kernel,
            grid=grid,
            in_specs=in_specs,
            out_specs=(out_spec, out_spec),
            out_shape=(out_shape, out_shape),
            compiler_params=pltpu.CompilerParams(
                dimension_semantics=("parallel", "parallel"),
                vmem_limit_bytes=32 * 1024 * 1024),
        )(x, *self.params)
        if l_pad != length:
            mu = mu[..., :length]
            logvar = logvar[..., :length]
        return mu, logvar


if __name__ == "__main__":
    key = jax.random.PRNGKey(0)
    k_params, k_params2, k_data, k_data2 = jax.random.split(key, 4)

    # Case 1: in_channels != out_channels (downsample path), non-128-multiple length (pads).
    batch, c_in, c_out, length = 2, 32, 16, 200
    model = ResidualFeatureCompressor(c_in, c_out, a=2.0, b=0.3, compression_power=2,
                                      key=k_params)
    feats = jax.random.normal(k_data, (batch, c_in, length), jnp.float32)
    mu, logvar = model(feats)
    jax.block_until_ready((mu, logvar))
    assert mu.shape == (batch, c_out, length) and logvar.shape == (batch, c_out, length)
    assert bool(jnp.all(jnp.isfinite(mu))) and bool(jnp.all(jnp.isfinite(logvar)))
    mu_ref = _res_block_reference(model.mu_raw, model.a, model.b, feats)
    lv_ref = _res_block_reference(model.lv_raw, model.a, model.b, feats)
    # bf16 MXU operands (f32 accumulation) -> compare to f32 reference at ~1e-2 tolerance.
    assert bool(jnp.allclose(mu, mu_ref, rtol=2e-2, atol=2e-2))
    assert bool(jnp.allclose(logvar, lv_ref, rtol=2e-2, atol=2e-2))

    # Case 2: in_channels == out_channels (identity residual), batch=1 -> length tile splits
    # so both v7x TensorCores get a grid point.
    c2, length2 = 16, 256
    model2 = ResidualFeatureCompressor(c2, c2, a=1.0, b=1.0, compression_power=2,
                                       key=k_params2)
    feats2 = jax.random.normal(k_data2, (1, c2, length2), jnp.float32)
    mu2, lv2 = model2(feats2)
    jax.block_until_ready((mu2, lv2))
    assert mu2.shape == (1, c2, length2) and lv2.shape == (1, c2, length2)
    mu2_ref = _res_block_reference(model2.mu_raw, model2.a, model2.b, feats2)
    lv2_ref = _res_block_reference(model2.lv_raw, model2.a, model2.b, feats2)
    assert bool(jnp.allclose(mu2, mu2_ref, rtol=2e-2, atol=2e-2))
    assert bool(jnp.allclose(lv2, lv2_ref, rtol=2e-2, atol=2e-2))

    print("KERNEL_OK")
</pallas_src>

<mosaic_0001>
module attributes {stable_mosaic.version = 11 : i64} {
  func.func @_fused_res_block_kernel(%arg0: i32, %arg1: i32, %arg2: memref<1x32x256xf32, #tpu.memory_space<vmem>>, %arg3: memref<64x3xf32, #tpu.memory_space<vmem>>, %arg4: memref<32x1xf32, #tpu.memory_space<vmem>>, %arg5: memref<64x64xbf16, #tpu.memory_space<vmem>>, %arg6: memref<32x64xbf16, #tpu.memory_space<vmem>>, %arg7: memref<32x32xbf16, #tpu.memory_space<vmem>>, %arg8: memref<1x16x256xf32, #tpu.memory_space<vmem>>, %arg9: memref<1x16x256xf32, #tpu.memory_space<vmem>>) attributes {dimension_semantics = [#tpu.dimension_semantics<parallel>, #tpu.dimension_semantics<parallel>], iteration_bounds = array<i64: 2, 1>, scalar_prefetch = 0 : i64, scratch_operands = 0 : i64, tpu.core_type = #tpu.core_type<tc>, window_params = [{transform_indices = @transform_0, window_bounds = array<i64: 1, 32, 256>}, {pipeline_mode = #tpu.pipeline_mode<synchronous>, transform_indices = @transform_1, window_bounds = array<i64: 64, 3>}, {pipeline_mode = #tpu.pipeline_mode<synchronous>, transform_indices = @transform_2, window_bounds = array<i64: 32, 1>}, {pipeline_mode = #tpu.pipeline_mode<synchronous>, transform_indices = @transform_3, window_bounds = array<i64: 64, 64>}, {pipeline_mode = #tpu.pipeline_mode<synchronous>, transform_indices = @transform_4, window_bounds = array<i64: 32, 64>}, {pipeline_mode = #tpu.pipeline_mode<synchronous>, transform_indices = @transform_5, window_bounds = array<i64: 32, 32>}, {transform_indices = @transform_6, window_bounds = array<i64: 1, 16, 256>}, {transform_indices = @transform_7, window_bounds = array<i64: 1, 16, 256>}]} {
    %c0 = arith.constant 0 : index
    %c0_0 = arith.constant 0 : index
    %c0_1 = arith.constant 0 : index
    %0 = vector.load %arg2[%c0, %c0_0, %c0_1] : memref<1x32x256xf32, #tpu.memory_space<vmem>>, vector<1x32x256xf32>
    %1 = vector.shape_cast %0 : vector<1x32x256xf32> to vector<32x256xf32>
    %2 = tpu.concatenate %1, %1 in 0 : vector<32x256xf32>, vector<32x256xf32> -> vector<64x256xf32>
    %c0_2 = arith.constant 0 : index
    %c0_3 = arith.constant 0 : index
    %3 = vector.load %arg3[%c0_2, %c0_3] : memref<64x3xf32, #tpu.memory_space<vmem>>, vector<64x1xf32>
    %c0_4 = arith.constant 0 : index
    %c1 = arith.constant 1 : index
    %4 = vector.load %arg3[%c0_4, %c1] : memref<64x3xf32, #tpu.memory_space<vmem>>, vector<64x1xf32>
    %c0_5 = arith.constant 0 : index
    %c2 = arith.constant 2 : index
    %5 = vector.load %arg3[%c0_5, %c2] : memref<64x3xf32, #tpu.memory_space<vmem>>, vector<64x1xf32>
    %c0_6 = arith.constant 0 : index
    %c0_7 = arith.constant 0 : index
    %6 = vector.load %arg4[%c0_6, %c0_7] : memref<32x1xf32, #tpu.memory_space<vmem>>, vector<32x1xf32>
    %7 = vector.broadcast %3 : vector<64x1xf32> to vector<64x256xf32>
    %8 = arith.mulf %2, %7 : vector<64x256xf32>
    %9 = vector.broadcast %4 : vector<64x1xf32> to vector<64x256xf32>
    %10 = arith.addf %8, %9 : vector<64x256xf32>
    %cst = arith.constant 0.000000e+00 : f32
    %11 = vector.broadcast %cst : f32 to vector<64x256xf32>
    %12 = arith.maximumf %10, %11 : vector<64x256xf32>
    %c0_8 = arith.constant 0 : index
    %c0_9 = arith.constant 0 : index
    %13 = vector.load %arg5[%c0_8, %c0_9] : memref<64x64xbf16, #tpu.memory_space<vmem>>, vector<64x64xbf16>
    %14 = arith.truncf %12 : vector<64x256xf32> to vector<64x256xbf16>
    %cst_10 = arith.constant dense<0.000000e+00> : vector<64x256xf32>
    %15 = tpu.matmul %13, %14, %cst_10 {dimension_numbers = #tpu.dot_dimension_numbers<[1], [0], [0], [1], [0, 0, 1, 1], [], []>} : vector<64x64xbf16>, vector<64x256xbf16>, vector<64x256xf32> -> vector<64x256xf32>
    %16 = vector.broadcast %5 : vector<64x1xf32> to vector<64x256xf32>
    %17 = arith.addf %15, %16 : vector<64x256xf32>
    %cst_11 = arith.constant 0.000000e+00 : f32
    %18 = vector.broadcast %cst_11 : f32 to vector<64x256xf32>
    %19 = arith.maximumf %17, %18 : vector<64x256xf32>
    %c0_12 = arith.constant 0 : index
    %c0_13 = arith.constant 0 : index
    %20 = vector.load %arg6[%c0_12, %c0_13] : memref<32x64xbf16, #tpu.memory_space<vmem>>, vector<32x64xbf16>
    %21 = arith.truncf %19 : vector<64x256xf32> to vector<64x256xbf16>
    %cst_14 = arith.constant dense<0.000000e+00> : vector<32x256xf32>
    %22 = tpu.matmul %20, %21, %cst_14 {dimension_numbers = #tpu.dot_dimension_numbers<[1], [0], [0], [1], [0, 0, 1, 1], [], []>} : vector<32x64xbf16>, vector<64x256xbf16>, vector<32x256xf32> -> vector<32x256xf32>
    %23 = vector.broadcast %6 : vector<32x1xf32> to vector<32x256xf32>
    %24 = arith.addf %22, %23 : vector<32x256xf32>
    %c0_15 = arith.constant 0 : index
    %c0_16 = arith.constant 0 : index
    %25 = vector.load %arg7[%c0_15, %c0_16] : memref<32x32xbf16, #tpu.memory_space<vmem>>, vector<32x32xbf16>
    %26 = arith.truncf %1 : vector<32x256xf32> to vector<32x256xbf16>
    %cst_17 = arith.constant dense<0.000000e+00> : vector<32x256xf32>
    %27 = tpu.matmul %25, %26, %cst_17 {dimension_numbers = #tpu.dot_dimension_numbers<[1], [0], [0], [1], [0, 0, 1, 1], [], []>} : vector<32x32xbf16>, vector<32x256xbf16>, vector<32x256xf32> -> vector<32x256xf32>
    %28 = arith.addf %24, %27 : vector<32x256xf32>
    %29 = vector.extract_strided_slice %28 {offsets = [0, 0], sizes = [16, 256], strides = [1, 1]} : vector<32x256xf32> to vector<16x256xf32>
    %c0_18 = arith.constant 0 : index
    %c0_19 = arith.constant 0 : index
    %c0_20 = arith.constant 0 : index
    %30 = vector.load %arg8[%c0_18, %c0_19, %c0_20] : memref<1x16x256xf32, #tpu.memory_space<vmem>>, vector<1x16x256xf32>
    %31 = vector.shape_cast %30 : vector<1x16x256xf32> to vector<16x256xf32>
    %32 = vector.shape_cast %29 : vector<16x256xf32> to vector<1x16x256xf32>
    tpu.vector_store %arg8[%c0_18, %c0_19, %c0_20], %32 {strides = array<i32>} : memref<1x16x256xf32, #tpu.memory_space<vmem>>, vector<1x16x256xf32>,
    %33 = vector.extract_strided_slice %28 {offsets = [16, 0], sizes = [16, 256], strides = [1, 1]} : vector<32x256xf32> to vector<16x256xf32>
    %c0_21 = arith.constant 0 : index
    %c0_22 = arith.constant 0 : index
    %c0_23 = arith.constant 0 : index
    %34 = vector.load %arg9[%c0_21, %c0_22, %c0_23] : memref<1x16x256xf32, #tpu.memory_space<vmem>>, vector<1x16x256xf32>
    %35 = vector.shape_cast %34 : vector<1x16x256xf32> to vector<16x256xf32>
    %36 = vector.shape_cast %33 : vector<16x256xf32> to vector<1x16x256xf32>
    tpu.vector_store %arg9[%c0_21, %c0_22, %c0_23], %36 {strides = array<i32>} : memref<1x16x256xf32, #tpu.memory_space<vmem>>, vector<1x16x256xf32>,
    return
  }
  func.func @transform_0(%arg0: i32, %arg1: i32) -> (i32, i32, i32) {
    %c0_i32 = arith.constant 0 : i32
    %c0_i32_0 = arith.constant 0 : i32
    return %arg0, %c0_i32, %arg1 : i32, i32, i32
  }
  func.func @transform_1(%arg0: i32, %arg1: i32) -> (i32, i32) {
    %c0_i32 = arith.constant 0 : i32
    %c0_i32_0 = arith.constant 0 : i32
    %c0_i32_1 = arith.constant 0 : i32
    return %c0_i32, %c0_i32_0 : i32, i32
  }
  func.func @transform_2(%arg0: i32, %arg1: i32) -> (i32, i32) {
    %c0_i32 = arith.constant 0 : i32
    %c0_i32_0 = arith.constant 0 : i32
    %c0_i32_1 = arith.constant 0 : i32
    return %c0_i32, %c0_i32_0 : i32, i32
  }
  func.func @transform_3(%arg0: i32, %arg1: i32) -> (i32, i32) {
    %c0_i32 = arith.constant 0 : i32
    %c0_i32_0 = arith.constant 0 : i32
    %c0_i32_1 = arith.constant 0 : i32
    return %c0_i32, %c0_i32_0 : i32, i32
  }
  func.func @transform_4(%arg0: i32, %arg1: i32) -> (i32, i32) {
    %c0_i32 = arith.constant 0 : i32
    %c0_i32_0 = arith.constant 0 : i32
    %c0_i32_1 = arith.constant 0 : i32
    return %c0_i32, %c0_i32_0 : i32, i32
  }
  func.func @transform_5(%arg0: i32, %arg1: i32) -> (i32, i32) {
    %c0_i32 = arith.constant 0 : i32
    %c0_i32_0 = arith.constant 0 : i32
    %c0_i32_1 = arith.constant 0 : i32
    return %c0_i32, %c0_i32_0 : i32, i32
  }
  func.func @transform_6(%arg0: i32, %arg1: i32) -> (i32, i32, i32) {
    %c0_i32 = arith.constant 0 : i32
    %c0_i32_0 = arith.constant 0 : i32
    return %arg0, %c0_i32, %arg1 : i32, i32, i32
  }
  func.func @transform_7(%arg0: i32, %arg1: i32) -> (i32, i32, i32) {
    %c0_i32 = arith.constant 0 : i32
    %c0_i32_0 = arith.constant 0 : i32
    return %arg0, %c0_i32, %arg1 : i32, i32, i32
  }
}

</mosaic_0001>

<bundles_post_ra>
// kernel: tpu_custom_call.1
= control target key start
LH: loop header
LB: loop body
LE: loop exit
PB: predicated region body
PF: predicated region fallthrough
CT: control target
= control target key end

     0   :  { %13 = vsyncpa [#allocation3], 0  ;;  %s1643_s0 = inlined_call_operand.hbm [shape: f32[2,32,256], index: 0, kind: input, shape index: {}]   ;;  %s1644_s1 = inlined_call_operand.vmem [shape: f32[64,3], index: 1, kind: input, shape index: {}]   ;;  %s1645_s2 = inlined_call_operand.vmem [shape: f32[32,1], index: 2, kind: input, shape index: {}]   ;;  %s1646_s3 = inlined_call_operand.vmem [shape: bf16[64,64], index: 3, kind: input, shape index: {}]   ;;  %s1647_s4 = inlined_call_operand.vmem [shape: bf16[32,64], index: 4, kind: input, shape index: {}]   ;;  %s1648_s5 = inlined_call_operand.vmem [shape: bf16[32,32], index: 5, kind: input, shape index: {}]   ;;  %s1649_s6 = inlined_call_operand.hbm [shape: f32[2,16,256], index: 6, kind: output, shape index: {0}]   ;;  %s1650_s7 = inlined_call_operand.hbm [shape: f32[2,16,256], index: 7, kind: output, shape index: {1}]  }
   0x1   :  { %15 = vsyncpa [#allocation3 + $0x1], 0 }
   0x2   :  { %16 = vsyncpa [#allocation4], 0 }
   0x3   :  { %18 = vsyncpa [#allocation4 + $0x1], 0 }
   0x4   :  { %19 = vsyncpa [#allocation7], 0 }
   0x5   :  { %21 = vsyncpa [#allocation7 + $0x1], 0  ;;  %s1323_s24 = smov 0   ;;  %s1325_s25 = smov 0  }
   0x6   :  { %s1327_s26 = smov 0   ;;  %s1329_s27 = smov 0  }
   0x7   :  { %s1331_s28 = smov 0   ;;  %s1333_s29 = smov 0  }
   0x8 LB: > { %s998_s30 = sadd.s32 4294967295, %s1271_s29   ;;  %s999_s8 = sadd.s32 4294967294, %s1271_s29   ;;  %s1271_s29 = sphi %s1333_s29, %s27_s29   ;;  %s1267_s28 = sphi %s1331_s28, %s1666_s28   ;;  %s1263_s27 = sphi %s1329_s27, %s1665_s27   ;;  %s1259_s26 = sphi %s1327_s26, %s1664_s26   ;;  %s1255_s25 = sphi %s1325_s25, %s1663_s25   ;;  %s1251_s24 = sphi %s1323_s24, %s1662_s24  }
   0x9   : > { %s39_s9 = sadd.s32 1, %s1267_s28  ;;  %s48_s10 = sadd.s32 1, %s1259_s26 }
   0xa   : > { %p41_p0 = scmp.ge.s32.totalorder %s39_s9, 2  ;;  %p55_p1 = scmp.ne.s32.totalorder %s1259_s26, %s1255_s25 }
   0xb   : > { %p56_p2 = scmp.eq.s32.totalorder %s1271_s29, 0  ;;  %p61_p3 = scmp.ne.s32.totalorder %s1255_s25, %s1251_s24 }
   0xc   : > { %s1668_s9 = smov (%p41_p0, %s39_s9), 0  ;;  %p62_p5 = scmp.eq.s32.totalorder %s998_s30, 0 }
   0xd   : > { %1653 = sst [smem:[#allocation11_spill]] %s1668_s9  ;;  %p1364_p4 = por %p56_p2, %p55_p1 }
   0xe   : > { %s43_s12 = ssub.s32 %s1267_s28, %s1668_s9  ;;  %p192_p6 = scmp.eq.s32.totalorder %s998_s30, 1 }
   0xf   : > { %p46_p7 = scmp.eq.s32.totalorder %s43_s12, 0  ;;  %p1370_p8 = por %p62_p5, %p61_p3 }
  0x10   : > { %p1374_p9 = por %p192_p6, %p55_p1  ;;  %p198_p10 = scmp.eq.s32.totalorder %s999_s8, 1 }
  0x11   : > { %s1379_s15 = scalar_select %p46_p7, %s1259_s26, %s48_s10  }
  0x12   : > { %p1381_p11 = por %p198_p10, %p61_p3  ;;  %p1053_p13 = scmp.lt.s32.totalorder %s1271_s29, 2 }
  0x13   : > { %s261_s17 = sand.u32 1, %s1259_s26   ;;  %s1033_s19 = sshll.u32 %s1267_s28, 10 }
  0x14   : > { %s1002_s18 = sshll.u32 %s261_s17, 6  ;;  %s273_s22 = scalar_lea.hbm %s1643_s0, %s1033_s19 }
  0x15   : > { %s265_s23 = scalar_lea.vmem [#allocation2], %s1002_s18  ;;  %p1394_p0 = pnand %p1053_p13, %p1364_p4 }
  0x16   : > { %s274_s30 = sshll.u32 %s265_s23, 4  ;;  %p1005_p1 = scmp.ge.s32.totalorder %s1271_s29, 1  ;;  %s275_s30 = int_to_ptr.vmem [resolvable:$true] %s274_s30 }
  0x17   : > { %s262_s10 = scalar_lea.sflag [#allocation3], %s261_s17  ;;  %p1135_p2 = pneg %p1394_p0 }
  0x18   : > { %s1146_s12 = scalar_lea.vmem %s275_s30, 1024  ;;  %s1273_s9 = smov [#allocation2]  }
  0x19   : > { %p1147_p3 = scmp.ne.s32.totalorder %s275_s30, %s1146_s12  ;;  %s1151_s20 = sshll.u32 %s1273_s9, 4  ;;  %s1152_s20 = int_to_ptr.vmem [resolvable:$false] %s1151_s20 }
  0x1a   : > { %s1153_s18 = scalar_lea.vmem %s1152_s20, 2048  ;;  %p1154_p7 = scmp.lt.s32.totalorder %s275_s30, %s1152_s20 }
  0x1b   : > { %p1149_p5 = pnand %p1147_p3, %p1135_p2  ;;  %p1155_p10 = scmp.lt.s32.totalorder %s1153_s18, %s1146_s12 }
  0x1d   : > { %p1150_p6 = pneg %p1149_p5  ;;  %p1156_p12 = por %p1155_p10, %p1154_p7 }
  0x1f   : > { %p1157_p4 = pnand %p1156_p12, %p1150_p6 }
  0x21   : > { %1160 = shalt.err (!%p1157_p4)
}
  0x22   : > { %s1274_s11 = smov 256   ;;  %s1275_s17 = smov 16  }
  0x23   : > { %1045 = dma.hbm_to_vmem [thread:$0]  (!%p1394_p0), %s273_s22, 1024, %s275_s30, %s262_s10, %s1274_s11, %s1274_s11, %s1275_s17  }
  0x24   : > { %p282_p13 = scmp.lt.s32.totalorder %s1271_s29, 3 }
  0x26   : > { %p283_p2 = pnand %p1005_p1, %p282_p13 }
  0x27   : > { %s1407_s9 = sand.u32 (!%p283_p2), 1, %s1255_s25  }
  0x28   : > { %286 = sbr.rel (%p283_p2) target bundleno = 722 (0x2d2), region = 44  ;;  %s1006_s19 = sshll.u32 (!%p283_p2), %s1407_s9, 6 }
  0x29   : > { %s289_s21 = scalar_lea.sflag (!%p283_p2), [#allocation3], %s1407_s9  ;;  %s1411_s23 = scalar_lea.vmem (!%p283_p2), [#allocation2], %s1006_s19 }
  0x2d   : > { %1238 = dma.done.wait (%p1370_p8), %s289_s21, 1024  }
  0x2e   : > { %1240 = vsyncadd (%p1370_p8), %s289_s21, 4294966272  ;;  %v1276_v0 = vmov 1   ;;  %v1277_v1 = vmov 0   ;;  %v346_v2 = vld [vmem:[%s1644_s1 + $0x30] sm:$0xff]  ;;  %v347_v3 = vld [vmem:[%s1644_s1 + $0x38] sm:$0xff]  ;;  %v1278_v10 = vmov 2  }
  0x2f   : > { %1111 = vset.pattern.permute.xlu1 %v1276_v0  ;;  %1110 = vset.pattern.permute.xlu0 %v1277_v1  ;;  %v344_v4 = vld [vmem:[%s1644_s1 + $0x20] sm:$0xff]  ;;  %v345_v5 = vld [vmem:[%s1644_s1 + $0x28] sm:$0xff]  ;;  %v343_v6 = vld [vmem:[%s1644_s1 + $0x18] sm:$0xff]  ;;  %vm540_vm0 = vcmask 523264   ;;  %vm761_vm1 = vcmask 261120   ;;  %s1007_s8 = sshll.u32 %s1407_s9, 5 }
  0x30   : > { %585 = vmatprep.mubr.bf16.mxu0 %v1277_v1  ;;  %722 = vmatprep.mubr.bf16.mxu1 %v1277_v1  ;;  %v342_v7 = vld [vmem:[%s1644_s1 + $0x10] sm:$0xff]  ;;  %v340_v8 = vld [vmem:[%s1644_s1] sm:$0xff]  ;;  %v341_v9 = vld [vmem:[%s1644_s1 + $0x8] sm:$0xff]  ;;  %s320_s10 = scalar_lea.vmem [#allocation5], %s1007_s8  ;;  %s1652_s13 = sshll.u32 %s1263_s27, 9 }
  0x31   : > { %433 = vperm.xlu1 %1111, %v346_v2   ;;  %384 = vperm.xlu0 %1110, %v346_v2   ;;  %v1451_v14 = vld [vmem:[%s1411_s23 + $0x20] sm:$0xff]  ;;  %v1454_v15 = vld [vmem:[%s1411_s23 + $0x28] sm:$0xff]  ;;  %v1459_v19 = vld [vmem:[%s1411_s23 + $0x30] sm:$0xff]  ;;  %s1557_s18 = scalar_lea.hbm %s1649_s6, %s1652_s13  ;;  %s838_s11 = scalar_lea.sflag [#allocation4], %s1407_s9 }
  0x32   : > { %v1462_v20 = vld [vmem:[%s1411_s23 + $0x38] sm:$0xff]  ;;  %v1465_v22 = vld [vmem:[%s1411_s23 + $0x10] sm:$0xff]  ;;  %v1473_v28 = vld [vmem:[%s1411_s23] sm:$0xff]  ;;  %s1279_s19 = smov [#allocation5]  }
  0x33   : > { %v1468_v23 = vld [vmem:[%s1411_s23 + $0x18] sm:$0xff]  ;;  %v1476_v29 = vld [vmem:[%s1411_s23 + $0x8] sm:$0xff]  ;;  %s858_s23 = sshll.u32 %s320_s10, 4  ;;  %s1165_s21 = sshll.u32 %s1279_s19, 4  ;;  %s1550_s23 = int_to_ptr.vmem [resolvable:$true] %s858_s23  ;;  %s1166_s21 = int_to_ptr.vmem [resolvable:$false] %s1165_s21 }
  0x34   : > { %s1161_s17 = scalar_lea.vmem %s1550_s23, 512  ;;  %s1167_s22 = scalar_lea.vmem %s1166_s21, 1024 }
  0x35   : > { %437 = vperm.xlu1 %1111, %v347_v3   ;;  %1113 = vset.pattern.permute.xlu0 %v1276_v0  ;;  %p1162_p8 = scmp.ne.s32.totalorder %s1550_s23, %s1161_s17  ;;  %p1168_p1 = scmp.lt.s32.totalorder %s1550_s23, %s1166_s21 }
  0x36   : > { %425 = vperm.xlu0 %1113, %v344_v4   ;;  %p1169_p3 = scmp.lt.s32.totalorder %s1167_s22, %s1161_s17 }
  0x37   : > { %p1163_p12 = pnand %p1162_p8, %p1374_p9 }
  0x38   : > { %p1170_p5 = por %p1169_p3, %p1168_p1 }
  0x39   : > { %1112 = vset.pattern.permute.xlu1 %v1277_v1  ;;  %p1164_p0 = pneg %p1163_p12 }
  0x3a   : > { %379 = vperm.xlu1 %1112, %v345_v5   ;;  %1114 = vset.pattern.permute.xlu0 %v1277_v1 }
  0x3b   : > { %389 = vperm.xlu0 %1114, %v347_v3   ;;  %p1171_p6 = pnand %p1170_p5, %p1164_p0 }
  0x3e   : > { %1115 = vset.pattern.permute.xlu1 %v1276_v0 }
  0x3f   : > { %429 = vperm.xlu1 %1115, %v345_v5   ;;  %374 = vperm.xlu0 %1114, %v344_v4  }
  0x43   : > { %1116 = vset.pattern.permute.xlu1 %v1277_v1  ;;  %369 = vperm.xlu0 %1114, %v343_v6  }
  0x44   : > { %364 = vperm.xlu1 %1116, %v342_v7  }
  0x47   : > { %354 = vperm.xlu0 %1114, %v340_v8  }
  0x48   : > { %1117 = vset.pattern.permute.xlu1 %v1276_v0 }
  0x49   : > { %417 = vperm.xlu1 %1117, %v342_v7  }
  0x4b   : > { %1119 = vset.pattern.permute.xlu0 %v1276_v0 }
  0x4c   : > { %409 = vperm.xlu0 %1119, %v340_v8  }
  0x4d   : > { %421 = vperm.xlu1 %1117, %v343_v6  }
  0x50   : > { %1122 = vset.pattern.permute.xlu0 %v1278_v10 }
  0x51   : > { %1118 = vset.pattern.permute.xlu1 %v1277_v1  ;;  %517 = vperm.xlu0 %1122, %v347_v3  }
  0x52   : > { %359 = vperm.xlu1 %1118, %v341_v9  }
  0x55   : > { %497 = vperm.xlu0 %1122, %v342_v7  }
  0x56   : > { %1120 = vset.pattern.permute.xlu1 %v1276_v0 }
  0x57   : > { %413 = vperm.xlu1 %1120, %v341_v9  }
  0x59   : > { %489 = vperm.xlu0 %1122, %v340_v8  }
  0x5b   : > { %1121 = vset.pattern.permute.xlu1 %v1278_v10 }
  0x5c   : > { %513 = vperm.xlu1 %1121, %v346_v2  }
  0x5d   : > { %1123 = vset.pattern.permute.xlu0 %v1277_v1 }
  0x60   : > { %505 = vperm.xlu1 %1121, %v344_v4  }
  0x64   : > { %509 = vperm.xlu1 %1121, %v345_v5  }
  0x68   : > { %501 = vperm.xlu1 %1121, %v343_v6  }
  0x6c   : > { %493 = vperm.xlu1 %1121, %v341_v9  }
  0x70   : > { %1124 = vset.pattern.permute.xlu1 %v1277_v1 }
  0xac   : > { %v434_v11 = vpop.permute.xlu1 %433  ;;  %v385_v12 = vpop.permute.xlu0 %384 }
  0xad   : > { %v404_v17 = vmul.f32 %v385_v12, %v1451_v14  ;;  %v405_v18 = vmul.f32 %v385_v12, %v1454_v15 }
  0xaf   : > { %v452_v27 = vadd.f32 %v434_v11, %v404_v17  ;;  %v453_v30 = vadd.f32 %v434_v11, %v405_v18 }
  0xb0   : > { %v438_v13 = vpop.permute.xlu1 %437 }
  0xb1   : > { %v426_v16 = vpop.permute.xlu0 %425  ;;  %v469_v41 = vmax.f32 %v453_v30, 0.0  ;;  %v468_v43 = vmax.f32 %v452_v27, 0.0 }
  0xb5   : > { %v380_v21 = vpop.permute.xlu1 %379 }
  0xb6   : > { %v390_v24 = vpop.permute.xlu0 %389  ;;  %v402_v31 = vmul.f32 %v380_v21, %v1465_v22  ;;  %v403_v32 = vmul.f32 %v380_v21, %v1468_v23 }
  0xb7   : > { %v406_v25 = vmul.f32 %v390_v24, %v1459_v19  ;;  %v407_v26 = vmul.f32 %v390_v24, %v1462_v20 }
  0xb9   : > { %v454_v33 = vadd.f32 %v438_v13, %v406_v25  ;;  %v455_v34 = vadd.f32 %v438_v13, %v407_v26 }
  0xba   : > { %v430_v35 = vpop.permute.xlu1 %429  ;;  %v375_v36 = vpop.permute.xlu0 %374 }
  0xbb   : > { %v450_v37 = vadd.f32 %v430_v35, %v402_v31  ;;  %v451_v38 = vadd.f32 %v430_v35, %v403_v32  ;;  %v400_v39 = vmul.f32 %v375_v36, %v1473_v28  ;;  %v401_v40 = vmul.f32 %v375_v36, %v1476_v29  ;;  %v1125_v36 = vld [vmem:[%s1646_s3] sm:$0xff]  }
  0xbc   : > { %v471_v42 = vmax.f32 %v455_v34, 0.0  ;;  %v470_v44 = vmax.f32 %v454_v33, 0.0 }
  0xbd   : > { %v448_v45 = vadd.f32 %v426_v16, %v400_v39  ;;  %v449_v46 = vadd.f32 %v426_v16, %v401_v40  ;;  %v466_v49 = vmax.f32 %v450_v37, 0.0  ;;  %v467_v50 = vmax.f32 %v451_v38, 0.0  ;;  %v1126_v37 = vld [vmem:[%s1646_s3 + $0x8] sm:$0xff]   ;;  %v1127_v38 = vld [vmem:[%s1646_s3 + $0x10] sm:$0xff]   ;;  %v1128_v39 = vld [vmem:[%s1646_s3 + $0x18] sm:$0xff]  }
  0xbe   : > { %v487_v47 = vpack.c.bf16 %v471_v42, %v469_v41  ;;  %v486_v48 = vpack.c.bf16 %v470_v44, %v468_v43  ;;  %v370_v56 = vpop.permute.xlu0 %369  ;;  %v348_v40 = vld [vmem:[%s1645_s2] sm:$0xff]  ;;  %v349_v41 = vld [vmem:[%s1645_s2 + $0x8] sm:$0xff]  ;;  %v350_v42 = vld [vmem:[%s1645_s2 + $0x10] sm:$0xff] }
  0xbf   : > { %v464_v51 = vmax.f32 %v448_v45, 0.0  ;;  %v465_v52 = vmax.f32 %v449_v46, 0.0  ;;  %v365_v53 = vpop.permute.xlu1 %364  ;;  %v398_v60 = vmul.f32 %v370_v56, %v1459_v19  ;;  %v399_v61 = vmul.f32 %v370_v56, %v1462_v20  ;;  %656 = vperm.xlu0 %1123, %v348_v40   ;;  %661 = vperm.xlu1 %1124, %v349_v41   ;;  %v351_v43 = vld [vmem:[%s1645_s2 + $0x18] sm:$0xff] }
  0xc0   : > { %561 = vmatprep.subr.bf16.mxu0 %v487_v47  ;;  %v396_v58 = vmul.f32 %v365_v53, %v1451_v14  ;;  %v397_v59 = vmul.f32 %v365_v53, %v1454_v15 }
  0xc1   : > { %562 = vmatpush1.bf16.msra.mxu0 %v486_v48  ;;  %v485_v54 = vpack.c.bf16 %v467_v50, %v465_v52  ;;  %v484_v55 = vpack.c.bf16 %v466_v49, %v464_v51 }
  0xc2   : > { %v355_v0 = vpop.permute.xlu0 %354 }
  0xc3   : > { %563 = vmatprep.subr.bf16.mxu0 %v485_v54  ;;  %v392_v13 = vmul.f32 %v355_v0, %v1473_v28  ;;  %v393_v16 = vmul.f32 %v355_v0, %v1476_v29  ;;  %666 = vperm.xlu1 %1124, %v350_v42  }
  0xc4   : > { %v418_v57 = vpop.permute.xlu1 %417  ;;  %671 = vperm.xlu0 %1123, %v351_v43  }
  0xc5   : > { %564 = vmatpush1.bf16.msra.mxu0 %v484_v55  ;;  %v444_v62 = vadd.f32 %v418_v57, %v396_v58  ;;  %v445_v63 = vadd.f32 %v418_v57, %v397_v59 }
  0xc7   : > { %v460_v5 = vmax.f32 %v444_v62, 0.0  ;;  %v461_v6 = vmax.f32 %v445_v63, 0.0  ;;  %v410_v12 = vpop.permute.xlu0 %409 }
  0xc8   : > { %v422_v2 = vpop.permute.xlu1 %421  ;;  %v440_v17 = vadd.f32 %v410_v12, %v392_v13  ;;  %v441_v18 = vadd.f32 %v410_v12, %v393_v16 }
  0xc9   : > { %v446_v3 = vadd.f32 %v422_v2, %v398_v60  ;;  %v447_v4 = vadd.f32 %v422_v2, %v399_v61 }
  0xca   : > { %v456_v30 = vmax.f32 %v440_v17, 0.0  ;;  %v457_v31 = vmax.f32 %v441_v18, 0.0 }
  0xcb   : > { %v462_v7 = vmax.f32 %v446_v3, 0.0  ;;  %v463_v8 = vmax.f32 %v447_v4, 0.0 }
  0xcc   : > { %v518_v60 = vpop.permute.xlu0 %517 }
  0xcd   : > { %v360_v9 = vpop.permute.xlu1 %359  ;;  %v483_v10 = vpack.c.bf16 %v463_v8, %v461_v6  ;;  %v482_v11 = vpack.c.bf16 %v462_v7, %v460_v5 }
  0xce   : > { %v394_v21 = vmul.f32 %v360_v9, %v1465_v22  ;;  %v395_v24 = vmul.f32 %v360_v9, %v1468_v23 }
  0xcf   : > { %565 = vmatprep.subr.bf16.mxu0 %v483_v10 }
  0xd0   : > { %566 = vmatpush1.bf16.msra.mxu0 %v482_v11  ;;  %v498_v8 = vpop.permute.xlu0 %497 }
  0xd2   : > { %v414_v25 = vpop.permute.xlu1 %413 }
  0xd3   : > { %v442_v26 = vadd.f32 %v414_v25, %v394_v21  ;;  %v443_v27 = vadd.f32 %v414_v25, %v395_v24 }
  0xd5   : > { %v458_v32 = vmax.f32 %v442_v26, 0.0  ;;  %v459_v33 = vmax.f32 %v443_v27, 0.0 }
  0xd7   : > { %v481_v34 = vpack.c.bf16 %v459_v33, %v457_v31  ;;  %v480_v35 = vpack.c.bf16 %v458_v32, %v456_v30  ;;  %v514_v50 = vpop.permute.xlu1 %513 }
  0xd9   : > { %567 = vmatprep.subr.bf16.mxu0 %v481_v34 }
  0xda   : > { %568 = vmatpush1.bf16.msra.mxu0 %v480_v35  ;;  %v490_v35 = vpop.permute.xlu0 %489 }
  0xdb   : > { %v506_v54 = vpop.permute.xlu1 %505 }
  0xdd   : > { %1013 = vmatmul.mubr.msk.bf16.vlgmr.msra.gmra.mxu0 %vm540_vm0, %v1125_v36 }
  0xde   : > { %595 = vmatprep.mubr.bf16.mxu0 %v1277_v1 }
  0xdf   : > { %v510_v58 = vpop.permute.xlu1 %509 }
  0xe3   : > { %v502_v3 = vpop.permute.xlu1 %501 }
  0xe5   : > { %1014 = vmatmul.mubr.msk.bf16.gmra.mxu0 %vm540_vm0, %v1126_v37 }
  0xe6   : > { %605 = vmatprep.mubr.bf16.mxu0 %v1277_v1 }
  0xe7   : > { %v494_v26 = vpop.permute.xlu1 %493 }
  0xed   : > { %1015 = vmatmul.mubr.msk.bf16.gmra.mxu0 %vm540_vm0, %v1127_v38 }
  0xee   : > { %615 = vmatprep.mubr.bf16.mxu0 %v1277_v1 }
  0xf5   : > { %1016 = vmatmul.mubr.msk.bf16.gmra.mxu0 %vm540_vm0, %v1128_v39 }
 0x19d   : > { %v587_v44 = vpop.f32.mrf.mxu0 }
 0x19f   : > { %v589_v45 = vpop.f32.mrf.mxu0 }
 0x1a0   : > { %v590_v38 = vadd.f32 %v589_v45, %v490_v35  ;;  %v750_v45 = vpack.c.bf16 %v1462_v20, %v1454_v15  ;;  %v1130_v15 = vld [vmem:[%s1647_s4 + $0x8] sm:$0xff]  }
 0x1a1   : > { %v591_v46 = vpop.f32.mrf.mxu0 }
 0x1a2   : > { %v592_v40 = vadd.f32 %v591_v46, %v494_v26  ;;  %v1129_v46 = vld [vmem:[%s1647_s4] sm:$0xff]  }
 0x1a3   : > { %v593_v47 = vpop.f32.mrf.mxu0 }
 0x1a4   : > { %v594_v32 = vadd.f32 %v593_v47, %v494_v26  ;;  %v628_v47 = vmax.f32 %v592_v40, 0.0 }
 0x1a5   : > { %v597_v48 = vpop.f32.mrf.mxu0 }
 0x1a6   : > { %v598_v36 = vadd.f32 %v597_v48, %v498_v8  ;;  %v629_v43 = vmax.f32 %v594_v32, 0.0 }
 0x1a7   : > { %v599_v49 = vpop.f32.mrf.mxu0 }
 0x1a8   : > { %v600_v21 = vadd.f32 %v599_v49, %v498_v8 }
 0x1a9   : > { %v601_v51 = vpop.f32.mrf.mxu0 }
 0x1aa   : > { %v602_v27 = vadd.f32 %v601_v51, %v502_v3  ;;  %v631_v39 = vmax.f32 %v600_v21, 0.0  ;;  %v630_v51 = vmax.f32 %v598_v36, 0.0 }
 0x1ab   : > { %v603_v52 = vpop.f32.mrf.mxu0 }
 0x1ac   : > { %v604_v11 = vadd.f32 %v603_v52, %v502_v3  ;;  %v632_v41 = vmax.f32 %v602_v27, 0.0  ;;  %v627_v52 = vmax.f32 %v590_v38, 0.0 }
 0x1ad   : > { %v607_v53 = vpop.f32.mrf.mxu0 }
 0x1ae   : > { %v608_v17 = vadd.f32 %v607_v53, %v506_v54  ;;  %v633_v33 = vmax.f32 %v604_v11, 0.0  ;;  %v648_v53 = vpack.c.bf16 %v632_v41, %v630_v51 }
 0x1af   : > { %v609_v55 = vpop.f32.mrf.mxu0 }
 0x1b0   : > { %v610_v6 = vadd.f32 %v609_v55, %v506_v54  ;;  %v634_v37 = vmax.f32 %v608_v17, 0.0  ;;  %v649_v49 = vpack.c.bf16 %v633_v33, %v631_v39  ;;  %v647_v54 = vpack.c.bf16 %v629_v43, %v627_v52 }
 0x1b1   : > { %v611_v56 = vpop.f32.mrf.mxu0 }
 0x1b2   : > { %v612_v9 = vadd.f32 %v611_v56, %v510_v58  ;;  %v635_v24 = vmax.f32 %v610_v6, 0.0  ;;  %v748_v56 = vpack.c.bf16 %v1468_v23, %v1476_v29 }
 0x1b3   : > { %v613_v57 = vpop.f32.mrf.mxu0 }
 0x1b4   : > { %v614_v63 = vadd.f32 %v613_v57, %v510_v58  ;;  %v636_v30 = vmax.f32 %v612_v9, 0.0  ;;  %v747_v57 = vpack.c.bf16 %v1465_v22, %v1473_v28 }
 0x1b5   : > { %v617_v59 = vpop.f32.mrf.mxu0 }
 0x1b6   : > { %v618_v4 = vadd.f32 %v617_v59, %v514_v50  ;;  %v637_v12 = vmax.f32 %v614_v63, 0.0  ;;  %v650_v42 = vpack.c.bf16 %v636_v30, %v634_v37  ;;  %v657_v59 = vpop.permute.xlu0 %656 }
 0x1b7   : > { %v619_v61 = vpop.f32.mrf.mxu0 }
 0x1b8   : > { %v620_v0 = vadd.f32 %v619_v61, %v514_v50  ;;  %v638_v18 = vmax.f32 %v618_v4, 0.0  ;;  %v651_v34 = vpack.c.bf16 %v637_v12, %v635_v24  ;;  %v588_v50 = vadd.f32 %v587_v44, %v490_v35  ;;  %v662_v61 = vpop.permute.xlu1 %661 }
 0x1b9   : > { %v621_v62 = vpop.f32.mrf.mxu0  ;;  %v749_v44 = vpack.c.bf16 %v1459_v19, %v1451_v14  ;;  %v1131_v14 = vld [vmem:[%s1648_s5] sm:$0xff]   ;;  %v1132_v19 = vld [vmem:[%s1648_s5 + $0x8] sm:$0xff]  }
 0x1ba   : > { %v622_v2 = vadd.f32 %v621_v62, %v518_v60  ;;  %v639_v13 = vmax.f32 %v620_v0, 0.0  ;;  %v626_v55 = vmax.f32 %v588_v50, 0.0 }
 0x1bb   : > { %v623_v5 = vpop.f32.mrf.mxu0 }
 0x1bc   : > { %v624_v7 = vadd.f32 %v623_v5, %v518_v60  ;;  %v640_v10 = vmax.f32 %v622_v2, 0.0  ;;  %v646_v48 = vpack.c.bf16 %v628_v47, %v626_v55  ;;  %v667_v6 = vpop.permute.xlu1 %666 }
 0x1be   : > { %v641_v16 = vmax.f32 %v624_v7, 0.0  ;;  %v652_v31 = vpack.c.bf16 %v640_v10, %v638_v18 }
 0x1c0   : > { %v653_v25 = vpack.c.bf16 %v641_v16, %v639_v13  ;;  %v672_v13 = vpop.permute.xlu0 %671 }
 0x1c2   : > { %698 = vmatprep.subr.bf16.mxu1 %v653_v25 }
 0x1c3   : > { %699 = vmatpush1.bf16.msra.mxu1 %v652_v31 }
 0x1c4   : > { %700 = vmatprep.subr.bf16.mxu1 %v651_v34 }
 0x1c7   : > { %701 = vmatpush1.bf16.msra.mxu1 %v650_v42 }
 0x1c8   : > { %702 = vmatprep.subr.bf16.mxu1 %v649_v49 }
 0x1cb   : > { %703 = vmatpush1.bf16.msra.mxu1 %v648_v53 }
 0x1cc   : > { %704 = vmatprep.subr.bf16.mxu1 %v647_v54 }
 0x1cf   : > { %705 = vmatpush1.bf16.msra.mxu1 %v646_v48 }
 0x1d0   : > { %780 = vmatprep.subr.bf16.mxu1 %v750_v45 }
 0x1d2   : > { %1019 = vmatmul.mubr.msk.bf16.vlgmr.msra.gmra.mxu1 %vm540_vm0, %v1129_v46 }
 0x1d3   : > { %781 = vmatpush1.bf16.msra.mxu1 %v749_v44  ;;  %732 = vmatprep.mubr.bf16.mxu1 %v1277_v1 }
 0x1d4   : > { %782 = vmatprep.subr.bf16.mxu1 %v748_v56 }
 0x1d7   : > { %783 = vmatpush1.bf16.msra.mxu1 %v747_v57 }
 0x1da   : > { %1020 = vmatmul.mubr.msk.bf16.gmra.mxu1 %vm540_vm0, %v1130_v15 }
 0x1db   : > { %800 = vmatprep.mubr.bf16.mxu1 %v1277_v1 }
 0x1e2   : > { %1023 = vmatmul.mubr.msk.bf16.vlgmr.msra.gmra.mxu1 %vm761_vm1, %v1131_v14 }
 0x1e3   : > { %810 = vmatprep.mubr.bf16.mxu1 %v1277_v1 }
 0x1ea   : > { %1024 = vmatmul.mubr.msk.bf16.gmra.mxu1 %vm761_vm1, %v1132_v19 }
 0x292   : > { %v724_v20 = vpop.f32.mrf.mxu1 }
 0x293   : > { %v725_v63 = vadd.f32 %v724_v20, %v657_v59 }
 0x294   : > { %v726_v22 = vpop.f32.mrf.mxu1 }
 0x295   : > { %v727_v0 = vadd.f32 %v726_v22, %v657_v59 }
 0x296   : > { %v728_v23 = vpop.f32.mrf.mxu1 }
 0x297   : > { %v729_v4 = vadd.f32 %v728_v23, %v662_v61 }
 0x298   : > { %v730_v28 = vpop.f32.mrf.mxu1 }
 0x299   : > { %v731_v8 = vadd.f32 %v730_v28, %v662_v61 }
 0x29a   : > { %v734_v29 = vpop.f32.mrf.mxu1 }
 0x29b   : > { %v735_v11 = vadd.f32 %v734_v29, %v667_v6 }
 0x29c   : > { %v736_v58 = vpop.f32.mrf.mxu1 }
 0x29d   : > { %v737_v17 = vadd.f32 %v736_v58, %v667_v6 }
 0x29e   : > { %v738_v60 = vpop.f32.mrf.mxu1 }
 0x2a0   : > { %v740_v62 = vpop.f32.mrf.mxu1 }
 0x2a2   : > { %v802_v1 = vpop.f32.mrf.mxu1 }
 0x2a3   : > { %v821_v2 = vadd.f32 %v802_v1, %v725_v63 }
 0x2a4   : > { %v804_v3 = vpop.f32.mrf.mxu1 }
 0x2a5   : > { %829 = vst [vmem:[%s320_s10] sm:$0xff] %v821_v2  ;;  %v822_v5 = vadd.f32 %v804_v3, %v727_v0 }
 0x2a6   : > { %v806_v7 = vpop.f32.mrf.mxu1 }
 0x2a7   : > { %830 = vst [vmem:[%s320_s10 + $0x8] sm:$0xff] %v822_v5  ;;  %v823_v9 = vadd.f32 %v806_v7, %v729_v4 }
 0x2a8   : > { %v808_v10 = vpop.f32.mrf.mxu1 }
 0x2a9   : > { %831 = vst [vmem:[%s320_s10 + $0x10] sm:$0xff] %v823_v9  ;;  %v824_v12 = vadd.f32 %v808_v10, %v731_v8 }
 0x2aa   : > { %v812_v16 = vpop.f32.mrf.mxu1 }
 0x2ab   : > { %832 = vst [vmem:[%s320_s10 + $0x18] sm:$0xff] %v824_v12  ;;  %v825_v18 = vadd.f32 %v812_v16, %v735_v11 }
 0x2ac   : > { %v814_v21 = vpop.f32.mrf.mxu1 }
 0x2ad   : > { %1174 = shalt.err (!%p1171_p6)
}
 0x2ae   : > { %s1175_s30 = scalar_lea.hbm %s1557_s18, 512  ;;  %s1179_s20 = scalar_lea.hbm %s1649_s6, 1024 }
 0x2af   : > { %p1176_p7 = scmp.ne.s32.totalorder %s1557_s18, %s1175_s30  ;;  %p1180_p13 = scmp.lt.s32.totalorder %s1557_s18, %s1649_s6 }
 0x2b0   : > { %p1181_p2 = scmp.lt.s32.totalorder %s1179_s20, %s1175_s30 }
 0x2b1   : > { %p1177_p10 = pnand %p1176_p7, %p1374_p9 }
 0x2b2   : > { %p1182_p8 = por %p1181_p2, %p1180_p13 }
 0x2b3   : > { %p1178_p4 = pneg %p1177_p10 }
 0x2b5   : > { %p1183_p12 = pnand %p1182_p8, %p1178_p4 }
 0x2b7   : > { %1186 = shalt.err (!%p1183_p12)
}
 0x2b8   : > { %s1280_s17 = smov 256   ;;  %s1281_s21 = smov 16   ;;  %v739_v24 = vadd.f32 %v738_v60, %v672_v13  ;;  %v826_v25 = vadd.f32 %v814_v21, %v737_v17  ;;  %v816_v26 = vpop.f32.mrf.mxu1  ;;  %v741_v27 = vadd.f32 %v740_v62, %v672_v13 }
 0x2b9   : > { %1038 = dma.vmem_to_hbm [thread:$0]  (%p1374_p9), %s1550_s23, 512, %s1557_s18, %s838_s11, %s1280_s17, %s1280_s17, %s1281_s21  }
 0x2ba   : > { %s327_s13 = scalar_lea.vmem [#allocation6], %s1007_s8  ;;  %v827_v30 = vadd.f32 %v816_v26, %v739_v24  ;;  %v818_v31 = vpop.f32.mrf.mxu1  ;;  %s1659_s23 = sshll.u32 %s1263_s27, 9 }
 0x2bb   : > { %833 = vst [vmem:[%s327_s13] sm:$0xff] %v825_v18  ;;  %s876_s22 = sshll.u32 %s327_s13, 4  ;;  %834 = vst [vmem:[%s327_s13 + $0x8] sm:$0xff] %v826_v25  ;;  %v828_v32 = vadd.f32 %v818_v31, %v741_v27  ;;  %s1594_s8 = scalar_lea.hbm %s1650_s7, %s1659_s23  ;;  %s1587_s22 = int_to_ptr.vmem [resolvable:$true] %s876_s22 }
 0x2bc   : > { %835 = vst [vmem:[%s327_s13 + $0x10] sm:$0xff] %v827_v30  ;;  %s843_s30 = scalar_lea.sflag [#allocation7], %s1407_s9  ;;  %s1187_s10 = scalar_lea.vmem %s1587_s22, 512 }
 0x2bd   : > { %836 = vst [vmem:[%s327_s13 + $0x18] sm:$0xff] %v828_v32  ;;  %p1188_p0 = scmp.ne.s32.totalorder %s1587_s22, %s1187_s10  ;;  %s1282_s12 = smov [#allocation6]  }
 0x2be   : > { %s1191_s20 = sshll.u32 %s1282_s12, 4  ;;  %s1192_s20 = int_to_ptr.vmem [resolvable:$false] %s1191_s20 }
 0x2bf   : > { %p1189_p1 = pnand %p1188_p0, %p1374_p9  ;;  %s1193_s19 = scalar_lea.vmem %s1192_s20, 1024 }
 0x2c0   : > { %p1194_p5 = scmp.lt.s32.totalorder %s1587_s22, %s1192_s20  ;;  %p1195_p6 = scmp.lt.s32.totalorder %s1193_s19, %s1187_s10 }
 0x2c1   : > { %p1190_p3 = pneg %p1189_p1 }
 0x2c2   : > { %p1196_p7 = por %p1195_p6, %p1194_p5 }
 0x2c4   : > { %p1197_p10 = pnand %p1196_p7, %p1190_p3 }
 0x2c6   : > { %1200 = shalt.err (!%p1197_p10)
}
 0x2c7   : > { %s1201_s27 = scalar_lea.hbm %s1594_s8, 512  ;;  %s1205_s23 = scalar_lea.hbm %s1650_s7, 1024 }
 0x2c8   : > { %p1202_p4 = scmp.ne.s32.totalorder %s1594_s8, %s1201_s27  ;;  %p1206_p8 = scmp.lt.s32.totalorder %s1594_s8, %s1650_s7 }
 0x2c9   : > { %p1207_p12 = scmp.lt.s32.totalorder %s1205_s23, %s1201_s27 }
 0x2ca   : > { %p1203_p13 = pnand %p1202_p4, %p1374_p9 }
 0x2cb   : > { %p1208_p0 = por %p1207_p12, %p1206_p8 }
 0x2cc   : > { %p1204_p2 = pneg %p1203_p13 }
 0x2ce   : > { %p1209_p1 = pnand %p1208_p0, %p1204_p2 }
 0x2d0   : > { %1212 = shalt.err (!%p1209_p1)
}
 0x2d1   : > { %1039 = dma.vmem_to_hbm [thread:$0]  (%p1374_p9), %s1587_s22, 512, %s1594_s8, %s843_s30, %s1280_s17, %s1280_s17, %s1281_s21  }
 0x2d2 PF: > { %s891_s10 = sand.u32 1, %s1251_s24   ;;  %p1660_p3 = scmp.ge.s32.totalorder %s1271_s29, 2 }
 0x2d3   : > { %s892_s12 = scalar_lea.sflag [#allocation4], %s891_s10 }
 0x2d4   : > { %p1047_p5 = pnand %p1660_p3, %p1381_p11 }
 0x2d6   : > { %p1048_p6 = pneg %p1047_p5 }
 0x2d8   : > { %1242 = dma.done.wait (%p1048_p6), %s892_s12, 512  }
 0x2d9   : > { %1244 = vsyncadd (%p1048_p6), %s892_s12, 4294966784  ;;  %s901_s20 = scalar_lea.sflag [#allocation7], %s891_s10 }
 0x2da   : > { %1246 = dma.done.wait (%p1048_p6), %s901_s20, 512  }
 0x2db   : > { %1248 = vsyncadd (%p1048_p6), %s901_s20, 4294966784  ;;  %s27_s29 = sadd.s32 1, %s1271_s29   ;;  %s1661_s14 = sld [smem:[#allocation11_spill]] }
 0x2dc   : > { %p24_p7 = scmp.ge.s32.totalorder %s27_s29, 4   ;;  %s1662_s24 = smov %s1255_s25 }
 0x2dd   : > { %s1663_s25 = smov %s1259_s26  ;;  %s1664_s26 = smov %s1379_s15 }
 0x2de   : > { %s1665_s27 = smov %s1267_s28  ;;  %26 = sbr.rel (!%p24_p7) target bundleno = 8 (0x8), region = 106 }
 0x2e1   : > { %s1666_s28 = smov %s1661_s14 }
 0x2e3   :  { %906 = vsyncpa [#allocation3], 1 }
 0x2e4   :  { %908 = vsyncpa [#allocation3 + $0x1], 1 }
 0x2e5   :  { %909 = vsyncpa [#allocation4], 1 }
 0x2e6   :  { %911 = vsyncpa [#allocation4 + $0x1], 1 }
 0x2e7   :  { %912 = vsyncpa [#allocation7], 1 }
 0x2e8   :  { %914 = vsyncpa [#allocation7 + $0x1], 1 }

</bundles_post_ra>
